<compile_context>
chip_gen: v7x
topology: tpu7x:2x2x1
jax: 0.10.0
libtpu: 0.0.40
codegen_flags: <defaults>
</compile_context>

<pallas_src>
import jax
import jax.numpy as jnp
from jax import lax
from jax.experimental import pallas as pl
from jax.experimental.pallas import tpu as pltpu


def _round_up(n: int, m: int) -> int:
    return ((n + m - 1) // m) * m


def _fm_depth_rnn_kernel(x_ref, w_ih_ref, w_hh_ref, w_fc_ref, b_rnn_ref,
                         b_fc_ref, out_ref, pre_ref):
    """Shapes (all zero-padded, f32):
       x_ref:    (T*B_pad, D_pad)   time-major flattened input
       w_ih_ref: (D_pad, H_pad)     = W_ih^T
       w_hh_ref: (H_pad, H_pad)     = W_hh^T
       w_fc_ref: (H_pad, O_pad)     = W_fc^T
       b_rnn_ref:(1, H_pad)         = b_ih + b_hh
       b_fc_ref: (1, O_pad)
       out_ref:  (B_pad, O_pad)
       pre_ref:  (T*B_pad, H_pad)   VMEM scratch for the input projection
    """
    n_rows, h_pad = pre_ref.shape
    b_pad = out_ref.shape[0]
    seq_len = n_rows // b_pad

    # Non-recurrent input projection for ALL timesteps in one matmul, off the
    # serial critical path (the recurrence only reads 8-row slices of it).
    pre_ref[...] = (
        jnp.dot(x_ref[...], w_ih_ref[...], preferred_element_type=jnp.float32)
        + b_rnn_ref[...])

    def step(t, h):
        row = pl.multiple_of(t * b_pad, b_pad)
        pre_t = pre_ref[pl.ds(row, b_pad), :]
        # NOTE: W_hh^T is indexed inside the step on purpose (not hoisted):
        # a (256,256) f32 SSA value would pin all 64 vregs across the unrolled
        # loop and force spills on the serial path; Mosaic streams the matmul
        # RHS from VMEM instead.
        return jnp.tanh(
            pre_t
            + jnp.dot(h, w_hh_ref[...], preferred_element_type=jnp.float32))

    h0 = jnp.zeros((b_pad, h_pad), dtype=jnp.float32)     # init_hidden = zeros
    h_last = lax.fori_loop(0, seq_len, step, h0, unroll=True)

    # Fully-connected head on the last hidden state.
    out_ref[...] = (
        jnp.dot(h_last, w_fc_ref[...], preferred_element_type=jnp.float32)
        + b_fc_ref[...]).astype(out_ref.dtype)


def make_fm_depth_rnn_forward(w_ih, w_hh, b_ih, b_hh, w_fc, b_fc):
    """Build the forward pass.  Weight padding/transposition happens ONCE here
    (model init), not on every call.

    w_ih: (H, D), w_hh: (H, H), b_ih/b_hh: (H,)   -- torch.nn.RNN parameters
    w_fc: (O, H), b_fc: (O,)                      -- torch.nn.Linear parameters
    """
    f32 = jnp.float32
    H, D = w_ih.shape
    O = w_fc.shape[0]
    H_pad = _round_up(H, 128)      # lane multiple -> unmasked stores, clean MXU N
    O_pad = _round_up(O, 128)
    D_pad = _round_up(D, 128)

    # Pre-transposed, zero-padded weights (zero padding keeps results exact).
    w_ih_t = jnp.zeros((D_pad, H_pad), f32).at[:D, :H].set(jnp.asarray(w_ih, f32).T)
    w_hh_t = jnp.zeros((H_pad, H_pad), f32).at[:H, :H].set(jnp.asarray(w_hh, f32).T)
    w_fc_t = jnp.zeros((H_pad, O_pad), f32).at[:H, :O].set(jnp.asarray(w_fc, f32).T)
    b_rnn = jnp.zeros((1, H_pad), f32).at[0, :H].set(
        jnp.asarray(b_ih, f32) + jnp.asarray(b_hh, f32))
    b_out = jnp.zeros((1, O_pad), f32).at[0, :O].set(jnp.asarray(b_fc, f32))

    @jax.jit
    def forward(x):
        B, T, D_in = x.shape
        B_pad = _round_up(B, 8)    # sublane multiple

        # Per-call input prep only: time-major, batch/feature zero-pad, flatten.
        x_tm = jnp.zeros((T, B_pad, D_pad), f32)
        x_tm = x_tm.at[:, :B, :D_in].set(jnp.transpose(x.astype(f32), (1, 0, 2)))
        x_flat = x_tm.reshape(T * B_pad, D_pad)

        flops = (2 * T * B_pad * D_pad * H_pad          # input projection
                 + 2 * T * B_pad * H_pad * H_pad        # recurrence
                 + 2 * B_pad * H_pad * O_pad)           # FC head
        bytes_accessed = 4 * (T * B_pad * D_pad + D_pad * H_pad
                              + H_pad * H_pad + H_pad * O_pad
                              + H_pad + O_pad + B_pad * O_pad)
        cost = pl.CostEstimate(flops=flops,
                               transcendentals=T * B_pad * H_pad,
                               bytes_accessed=bytes_accessed)

        # No grid / no BlockSpecs: single invocation, every operand whole in
        # VMEM (~0.6 MiB total), no double-buffering pipeline.
        # (For much larger T or B, reintroduce a pipelined grid over T chunks
        #  and a "parallel" batch axis for v7x's two TensorCores.)
        out_pad = pl.pallas_call(
            _fm_depth_rnn_kernel,
            out_shape=jax.ShapeDtypeStruct((B_pad, O_pad), f32),
            scratch_shapes=[pltpu.VMEM((T * B_pad, H_pad), f32)],
            cost_estimate=cost,
        )(x_flat, w_ih_t, w_hh_t, w_fc_t, b_rnn, b_out)

        return out_pad[:B, :O].astype(x.dtype)

    return forward


def _reference_forward(x, w_ih, w_hh, b_ih, b_hh, w_fc, b_fc):
    """Pure-JAX reference matching torch.nn.RNN(batch_first) + Linear."""
    B, T, D = x.shape
    H = w_hh.shape[0]
    h = jnp.zeros((B, H), dtype=jnp.float32)
    for t in range(T):
        h = jnp.tanh(x[:, t, :] @ w_ih.T + b_ih + h @ w_hh.T + b_hh)
    return h @ w_fc.T + b_fc


if __name__ == "__main__":
    # Small shapes consistent with the module defaults.
    B, T, D = 4, 8, 2          # batch, seq, input_dim
    H, O = 136, 68             # hidden_size, output_dim

    key = jax.random.PRNGKey(0)
    ks = jax.random.split(key, 6)
    bound = 1.0 / jnp.sqrt(H)  # PyTorch default init range for RNN/Linear

    x = jax.random.normal(ks[0], (B, T, D), dtype=jnp.float32)
    w_ih = jax.random.uniform(ks[1], (H, D), minval=-bound, maxval=bound, dtype=jnp.float32)
    w_hh = jax.random.uniform(ks[2], (H, H), minval=-bound, maxval=bound, dtype=jnp.float32)
    b_ih = jax.random.uniform(ks[3], (H,), minval=-bound, maxval=bound, dtype=jnp.float32)
    b_hh = jax.random.uniform(ks[4], (H,), minval=-bound, maxval=bound, dtype=jnp.float32)
    w_fc = jax.random.uniform(ks[5], (O, H), minval=-bound, maxval=bound, dtype=jnp.float32)
    b_fc = jnp.linspace(-0.1, 0.1, O, dtype=jnp.float32)

    fm_depth_rnn_forward = make_fm_depth_rnn_forward(w_ih, w_hh, b_ih, b_hh, w_fc, b_fc)

    out = fm_depth_rnn_forward(x)
    out = jax.block_until_ready(out)

    ref = _reference_forward(x, w_ih, w_hh, b_ih, b_hh, w_fc, b_fc)
    assert out.shape == (B, O)
    # Both kernel and reference run the MXU at default precision (bf16 passes),
    # so they agree to well under 1e-3 at these magnitudes.
    assert jnp.allclose(out, ref, atol=1e-3, rtol=1e-3), (
        f"mismatch: max abs err = {jnp.max(jnp.abs(out - ref))}")

    print("KERNEL_OK")
</pallas_src>

<mosaic_0001>
module attributes {stable_mosaic.version = 11 : i64} {
  func.func @_fm_depth_rnn_kernel(%arg0: memref<64x128xf32, #tpu.memory_space<vmem>>, %arg1: memref<128x256xf32, #tpu.memory_space<vmem>>, %arg2: memref<256x256xf32, #tpu.memory_space<vmem>>, %arg3: memref<256x128xf32, #tpu.memory_space<vmem>>, %arg4: memref<1x256xf32, #tpu.memory_space<vmem>>, %arg5: memref<1x128xf32, #tpu.memory_space<vmem>>, %arg6: memref<8x128xf32, #tpu.memory_space<vmem>>, %arg7: memref<64x256xf32, #tpu.memory_space<vmem>>) attributes {dimension_semantics = [], scalar_prefetch = 0 : i64, scratch_operands = 1 : i64, tpu.core_type = #tpu.core_type<tc>} {
    %c0 = arith.constant 0 : index
    %c0_0 = arith.constant 0 : index
    %0 = vector.load %arg0[%c0, %c0_0] : memref<64x128xf32, #tpu.memory_space<vmem>>, vector<64x128xf32>
    %c0_1 = arith.constant 0 : index
    %c0_2 = arith.constant 0 : index
    %1 = vector.load %arg1[%c0_1, %c0_2] : memref<128x256xf32, #tpu.memory_space<vmem>>, vector<128x256xf32>
    %cst = arith.constant dense<0.000000e+00> : vector<64x256xf32>
    %2 = tpu.matmul %0, %1, %cst {dimension_numbers = #tpu.dot_dimension_numbers<[1], [0], [0], [1], [0, 0, 1, 1], [], []>} : vector<64x128xf32>, vector<128x256xf32>, vector<64x256xf32> -> vector<64x256xf32>
    %c0_3 = arith.constant 0 : index
    %c0_4 = arith.constant 0 : index
    %3 = vector.load %arg4[%c0_3, %c0_4] : memref<1x256xf32, #tpu.memory_space<vmem>>, vector<1x256xf32>
    %4 = vector.broadcast %3 : vector<1x256xf32> to vector<64x256xf32>
    %5 = arith.addf %2, %4 : vector<64x256xf32>
    %c0_5 = arith.constant 0 : index
    %c0_6 = arith.constant 0 : index
    %6 = vector.load %arg7[%c0_5, %c0_6] : memref<64x256xf32, #tpu.memory_space<vmem>>, vector<64x256xf32>
    tpu.vector_store %arg7[%c0_5, %c0_6], %5 {strides = array<i32>} : memref<64x256xf32, #tpu.memory_space<vmem>>, vector<64x256xf32>,
    %cst_7 = arith.constant 0.000000e+00 : f32
    %7 = vector.broadcast %cst_7 : f32 to vector<8x256xf32>
    %c0_i32 = arith.constant 0 : i32
    %c8_i32 = arith.constant 8 : i32
    %8 = arith.muli %c0_i32, %c8_i32 : i32
    %9 = tpu.assume_multiple %8, 8 : i32
    %10 = arith.index_cast %9 : i32 to index
    %c0_8 = arith.constant 0 : index
    %11 = vector.load %arg7[%10, %c0_8] : memref<64x256xf32, #tpu.memory_space<vmem>>, vector<8x256xf32>
    %c0_9 = arith.constant 0 : index
    %c0_10 = arith.constant 0 : index
    %12 = vector.load %arg2[%c0_9, %c0_10] : memref<256x256xf32, #tpu.memory_space<vmem>>, vector<256x256xf32>
    %cst_11 = arith.constant dense<0.000000e+00> : vector<8x256xf32>
    %13 = tpu.matmul %7, %12, %cst_11 {dimension_numbers = #tpu.dot_dimension_numbers<[1], [0], [0], [1], [0, 0, 1, 1], [], []>} : vector<8x256xf32>, vector<256x256xf32>, vector<8x256xf32> -> vector<8x256xf32>
    %14 = arith.addf %11, %13 : vector<8x256xf32>
    %15 = math.tanh %14 : vector<8x256xf32>
    %c1_i32 = arith.constant 1 : i32
    %c8_i32_12 = arith.constant 8 : i32
    %16 = arith.muli %c1_i32, %c8_i32_12 : i32
    %17 = tpu.assume_multiple %16, 8 : i32
    %18 = arith.index_cast %17 : i32 to index
    %c0_13 = arith.constant 0 : index
    %19 = vector.load %arg7[%18, %c0_13] : memref<64x256xf32, #tpu.memory_space<vmem>>, vector<8x256xf32>
    %c0_14 = arith.constant 0 : index
    %c0_15 = arith.constant 0 : index
    %20 = vector.load %arg2[%c0_14, %c0_15] : memref<256x256xf32, #tpu.memory_space<vmem>>, vector<256x256xf32>
    %cst_16 = arith.constant dense<0.000000e+00> : vector<8x256xf32>
    %21 = tpu.matmul %15, %20, %cst_16 {dimension_numbers = #tpu.dot_dimension_numbers<[1], [0], [0], [1], [0, 0, 1, 1], [], []>} : vector<8x256xf32>, vector<256x256xf32>, vector<8x256xf32> -> vector<8x256xf32>
    %22 = arith.addf %19, %21 : vector<8x256xf32>
    %23 = math.tanh %22 : vector<8x256xf32>
    %c2_i32 = arith.constant 2 : i32
    %c8_i32_17 = arith.constant 8 : i32
    %24 = arith.muli %c2_i32, %c8_i32_17 : i32
    %25 = tpu.assume_multiple %24, 8 : i32
    %26 = arith.index_cast %25 : i32 to index
    %c0_18 = arith.constant 0 : index
    %27 = vector.load %arg7[%26, %c0_18] : memref<64x256xf32, #tpu.memory_space<vmem>>, vector<8x256xf32>
    %c0_19 = arith.constant 0 : index
    %c0_20 = arith.constant 0 : index
    %28 = vector.load %arg2[%c0_19, %c0_20] : memref<256x256xf32, #tpu.memory_space<vmem>>, vector<256x256xf32>
    %cst_21 = arith.constant dense<0.000000e+00> : vector<8x256xf32>
    %29 = tpu.matmul %23, %28, %cst_21 {dimension_numbers = #tpu.dot_dimension_numbers<[1], [0], [0], [1], [0, 0, 1, 1], [], []>} : vector<8x256xf32>, vector<256x256xf32>, vector<8x256xf32> -> vector<8x256xf32>
    %30 = arith.addf %27, %29 : vector<8x256xf32>
    %31 = math.tanh %30 : vector<8x256xf32>
    %c3_i32 = arith.constant 3 : i32
    %c8_i32_22 = arith.constant 8 : i32
    %32 = arith.muli %c3_i32, %c8_i32_22 : i32
    %33 = tpu.assume_multiple %32, 8 : i32
    %34 = arith.index_cast %33 : i32 to index
    %c0_23 = arith.constant 0 : index
    %35 = vector.load %arg7[%34, %c0_23] : memref<64x256xf32, #tpu.memory_space<vmem>>, vector<8x256xf32>
    %c0_24 = arith.constant 0 : index
    %c0_25 = arith.constant 0 : index
    %36 = vector.load %arg2[%c0_24, %c0_25] : memref<256x256xf32, #tpu.memory_space<vmem>>, vector<256x256xf32>
    %cst_26 = arith.constant dense<0.000000e+00> : vector<8x256xf32>
    %37 = tpu.matmul %31, %36, %cst_26 {dimension_numbers = #tpu.dot_dimension_numbers<[1], [0], [0], [1], [0, 0, 1, 1], [], []>} : vector<8x256xf32>, vector<256x256xf32>, vector<8x256xf32> -> vector<8x256xf32>
    %38 = arith.addf %35, %37 : vector<8x256xf32>
    %39 = math.tanh %38 : vector<8x256xf32>
    %c4_i32 = arith.constant 4 : i32
    %c8_i32_27 = arith.constant 8 : i32
    %40 = arith.muli %c4_i32, %c8_i32_27 : i32
    %41 = tpu.assume_multiple %40, 8 : i32
    %42 = arith.index_cast %41 : i32 to index
    %c0_28 = arith.constant 0 : index
    %43 = vector.load %arg7[%42, %c0_28] : memref<64x256xf32, #tpu.memory_space<vmem>>, vector<8x256xf32>
    %c0_29 = arith.constant 0 : index
    %c0_30 = arith.constant 0 : index
    %44 = vector.load %arg2[%c0_29, %c0_30] : memref<256x256xf32, #tpu.memory_space<vmem>>, vector<256x256xf32>
    %cst_31 = arith.constant dense<0.000000e+00> : vector<8x256xf32>
    %45 = tpu.matmul %39, %44, %cst_31 {dimension_numbers = #tpu.dot_dimension_numbers<[1], [0], [0], [1], [0, 0, 1, 1], [], []>} : vector<8x256xf32>, vector<256x256xf32>, vector<8x256xf32> -> vector<8x256xf32>
    %46 = arith.addf %43, %45 : vector<8x256xf32>
    %47 = math.tanh %46 : vector<8x256xf32>
    %c5_i32 = arith.constant 5 : i32
    %c8_i32_32 = arith.constant 8 : i32
    %48 = arith.muli %c5_i32, %c8_i32_32 : i32
    %49 = tpu.assume_multiple %48, 8 : i32
    %50 = arith.index_cast %49 : i32 to index
    %c0_33 = arith.constant 0 : index
    %51 = vector.load %arg7[%50, %c0_33] : memref<64x256xf32, #tpu.memory_space<vmem>>, vector<8x256xf32>
    %c0_34 = arith.constant 0 : index
    %c0_35 = arith.constant 0 : index
    %52 = vector.load %arg2[%c0_34, %c0_35] : memref<256x256xf32, #tpu.memory_space<vmem>>, vector<256x256xf32>
    %cst_36 = arith.constant dense<0.000000e+00> : vector<8x256xf32>
    %53 = tpu.matmul %47, %52, %cst_36 {dimension_numbers = #tpu.dot_dimension_numbers<[1], [0], [0], [1], [0, 0, 1, 1], [], []>} : vector<8x256xf32>, vector<256x256xf32>, vector<8x256xf32> -> vector<8x256xf32>
    %54 = arith.addf %51, %53 : vector<8x256xf32>
    %55 = math.tanh %54 : vector<8x256xf32>
    %c6_i32 = arith.constant 6 : i32
    %c8_i32_37 = arith.constant 8 : i32
    %56 = arith.muli %c6_i32, %c8_i32_37 : i32
    %57 = tpu.assume_multiple %56, 8 : i32
    %58 = arith.index_cast %57 : i32 to index
    %c0_38 = arith.constant 0 : index
    %59 = vector.load %arg7[%58, %c0_38] : memref<64x256xf32, #tpu.memory_space<vmem>>, vector<8x256xf32>
    %c0_39 = arith.constant 0 : index
    %c0_40 = arith.constant 0 : index
    %60 = vector.load %arg2[%c0_39, %c0_40] : memref<256x256xf32, #tpu.memory_space<vmem>>, vector<256x256xf32>
    %cst_41 = arith.constant dense<0.000000e+00> : vector<8x256xf32>
    %61 = tpu.matmul %55, %60, %cst_41 {dimension_numbers = #tpu.dot_dimension_numbers<[1], [0], [0], [1], [0, 0, 1, 1], [], []>} : vector<8x256xf32>, vector<256x256xf32>, vector<8x256xf32> -> vector<8x256xf32>
    %62 = arith.addf %59, %61 : vector<8x256xf32>
    %63 = math.tanh %62 : vector<8x256xf32>
    %c7_i32 = arith.constant 7 : i32
    %c8_i32_42 = arith.constant 8 : i32
    %64 = arith.muli %c7_i32, %c8_i32_42 : i32
    %65 = tpu.assume_multiple %64, 8 : i32
    %66 = arith.index_cast %65 : i32 to index
    %c0_43 = arith.constant 0 : index
    %67 = vector.load %arg7[%66, %c0_43] : memref<64x256xf32, #tpu.memory_space<vmem>>, vector<8x256xf32>
    %c0_44 = arith.constant 0 : index
    %c0_45 = arith.constant 0 : index
    %68 = vector.load %arg2[%c0_44, %c0_45] : memref<256x256xf32, #tpu.memory_space<vmem>>, vector<256x256xf32>
    %cst_46 = arith.constant dense<0.000000e+00> : vector<8x256xf32>
    %69 = tpu.matmul %63, %68, %cst_46 {dimension_numbers = #tpu.dot_dimension_numbers<[1], [0], [0], [1], [0, 0, 1, 1], [], []>} : vector<8x256xf32>, vector<256x256xf32>, vector<8x256xf32> -> vector<8x256xf32>
    %70 = arith.addf %67, %69 : vector<8x256xf32>
    %71 = math.tanh %70 : vector<8x256xf32>
    %c8_i32_47 = arith.constant 8 : i32
    %c0_48 = arith.constant 0 : index
    %c0_49 = arith.constant 0 : index
    %72 = vector.load %arg3[%c0_48, %c0_49] : memref<256x128xf32, #tpu.memory_space<vmem>>, vector<256x128xf32>
    %cst_50 = arith.constant dense<0.000000e+00> : vector<8x128xf32>
    %73 = tpu.matmul %71, %72, %cst_50 {dimension_numbers = #tpu.dot_dimension_numbers<[1], [0], [0], [1], [0, 0, 1, 1], [], []>} : vector<8x256xf32>, vector<256x128xf32>, vector<8x128xf32> -> vector<8x128xf32>
    %c0_51 = arith.constant 0 : index
    %c0_52 = arith.constant 0 : index
    %74 = vector.load %arg5[%c0_51, %c0_52] : memref<1x128xf32, #tpu.memory_space<vmem>>, vector<1x128xf32>
    %75 = vector.broadcast %74 : vector<1x128xf32> to vector<8x128xf32>
    %76 = arith.addf %73, %75 : vector<8x128xf32>
    %c0_53 = arith.constant 0 : index
    %c0_54 = arith.constant 0 : index
    %77 = vector.load %arg6[%c0_53, %c0_54] : memref<8x128xf32, #tpu.memory_space<vmem>>, vector<8x128xf32>
    tpu.vector_store %arg6[%c0_53, %c0_54], %76 {strides = array<i32>} : memref<8x128xf32, #tpu.memory_space<vmem>>, vector<8x128xf32>,
    return
  }
}

</mosaic_0001>

<bundles_post_ra>
// kernel: forward.1
= control target key start
LH: loop header
LB: loop body
LE: loop exit
PB: predicated region body
PF: predicated region fallthrough
CT: control target
= control target key end

     0   :  { %11 = vsyncpa [#allocation4], 0  ;;  %s2295_s0 = inlined_call_operand.vmem [shape: f32[64,128], index: 0, kind: input, shape index: {}]   ;;  %s2296_s1 = inlined_call_operand.hbm [shape: f32[128,256], index: 1, kind: input, shape index: {}]   ;;  %s2297_s2 = inlined_call_operand.hbm [shape: f32[256,256], index: 2, kind: input, shape index: {}]   ;;  %s2298_s3 = inlined_call_operand.hbm [shape: f32[256,128], index: 3, kind: input, shape index: {}]   ;;  %s2299_s4 = inlined_call_operand.vmem [shape: f32[1,256], index: 4, kind: input, shape index: {}]   ;;  %s2300_s5 = inlined_call_operand.vmem [shape: f32[1,128], index: 5, kind: input, shape index: {}]   ;;  %s2301_s6 = inlined_call_operand.vmem [shape: f32[8,128], index: 6, kind: output, shape index: {}]  }
   0x1   :  { %12 = vsyncpa [#allocation6], 0  ;;  %s1826_s21 = smov [#allocation5]   ;;  %s1827_s23 = smov [#allocation3]  }
   0x2   :  { %s32_s22 = sshll.u32 %s1826_s21, 4  ;;  %s20_s24 = sshll.u32 %s1827_s23, 4  ;;  %s33_s22 = int_to_ptr.vmem [resolvable:$true] %s32_s22  ;;  %s1869_s24 = int_to_ptr.vmem [resolvable:$true] %s20_s24 }
   0x3   :  { %s1756_s27 = scalar_lea.hbm %s2297_s2, 8192 }
   0x4   :  { %p1757_p0 = scmp.ne.s32.totalorder %s2297_s2, %s1756_s27  ;;  %p1760_p1 = scmp.lt.u32.totalorder %s1756_s27, %s2297_s2 }
   0x6   :  { %p1762_p2 = pnand %p1760_p1, %p1757_p0 }
   0x8   :  { %1765 = shalt.err (!%p1762_p2)
}
   0x9   :  { %s1766_s8 = scalar_lea.vmem %s33_s22, 8192  ;;  %p1771_p4 = scmp.lt.s32.totalorder %s33_s22, %s33_s22 }
   0xa   :  { %p1767_p3 = scmp.ne.s32.totalorder %s33_s22, %s1766_s8  ;;  %p1772_p5 = scmp.lt.s32.totalorder %s1766_s8, %s1766_s8 }
   0xc   :  { %p1773_p6 = por %p1772_p5, %p1771_p4 }
   0xe   :  { %p1774_p7 = pnand %p1773_p6, %p1767_p3 }
  0x10   :  { %1777 = shalt.err (!%p1774_p7)
}
  0x11   :  { %s1828_s9 = smov 256   ;;  %s1829_s10 = smov 16  }
  0x12   :  { %38 = dma.hbm_to_vmem [thread:$0]  %s2297_s2, 8192, %s33_s22, [#allocation6], %s1828_s9, %s1828_s9, %s1829_s10  }
  0x13   :  { %s1778_s15 = scalar_lea.hbm %s2296_s1, 4096 }
  0x14   :  { %p1779_p8 = scmp.ne.s32.totalorder %s2296_s1, %s1778_s15  ;;  %p1782_p9 = scmp.lt.u32.totalorder %s1778_s15, %s2296_s1 }
  0x16   :  { %p1784_p10 = pnand %p1782_p9, %p1779_p8 }
  0x18   :  { %1787 = shalt.err (!%p1784_p10)
}
  0x19   :  { %s1788_s20 = scalar_lea.vmem %s1869_s24, 4096  ;;  %p1793_p12 = scmp.lt.s32.totalorder %s1869_s24, %s1869_s24 }
  0x1a   :  { %p1789_p11 = scmp.ne.s32.totalorder %s1869_s24, %s1788_s20  ;;  %p1794_p13 = scmp.lt.s32.totalorder %s1788_s20, %s1788_s20 }
  0x1c   :  { %p1795_p0 = por %p1794_p13, %p1793_p12 }
  0x1e   :  { %p1796_p1 = pnand %p1795_p0, %p1789_p11 }
  0x20   :  { %1799 = shalt.err (!%p1796_p1)
}
  0x21   :  { %26 = dma.hbm_to_vmem [thread:$0]  %s2296_s1, 4096, %s1869_s24, [#allocation4], %s1828_s9, %s1828_s9, %s1829_s10  }
  0x22   :  { %s1830_s22 = smov [#allocation7]   ;;  %s1800_s27 = scalar_lea.hbm %s2298_s3, 4096 }
  0x23   :  { %s44_s23 = sshll.u32 %s1830_s22, 4  ;;  %p1801_p2 = scmp.ne.s32.totalorder %s2298_s3, %s1800_s27  ;;  %s45_s23 = int_to_ptr.vmem [resolvable:$true] %s44_s23 }
  0x24   :  { %p1804_p3 = scmp.lt.u32.totalorder %s1800_s27, %s2298_s3 }
  0x26   :  { %p1806_p4 = pnand %p1804_p3, %p1801_p2 }
  0x28   :  { %1809 = shalt.err (!%p1806_p4)
}
  0x29   :  { %s1810_s8 = scalar_lea.vmem %s45_s23, 4096  ;;  %p1815_p6 = scmp.lt.s32.totalorder %s45_s23, %s45_s23 }
  0x2a   :  { %p1811_p5 = scmp.ne.s32.totalorder %s45_s23, %s1810_s8  ;;  %p1816_p7 = scmp.lt.s32.totalorder %s1810_s8, %s1810_s8 }
  0x2c   :  { %p1817_p8 = por %p1816_p7, %p1815_p6 }
  0x2e   :  { %p1818_p9 = pnand %p1817_p8, %p1811_p5 }
  0x30   :  { %1821 = shalt.err (!%p1818_p9)
}
  0x31   :  { %s1831_s1 = smov 128   ;;  %s1832_s24 = smov 8  }
  0x32   :  { %50 = dma.hbm_to_vmem [thread:$0]  %s2298_s3, 4096, %s45_s23, [#allocation6], %s1831_s1, %s1831_s1, %s1832_s24  }
  0x33   :  { %1822 = dma.done.wait [#allocation4], 4096  }
  0x34   :  { %1823 = vsyncadd [#allocation4], 4294963200 }
  0x35   :  { %1824 = dma.done.wait [#allocation6], 12288  }
  0x36   :  { %1825 = vsyncadd [#allocation6], 4294955008  ;;  %v1833_v0 = vmov 0.0   ;;  %v251_v1 = vld [vmem:[#allocation5 + $0x8] sm:$0xff]  ;;  %v253_v2 = vld [vmem:[#allocation5 + $0x18] sm:$0xff] }
  0x37   :  { %180 = vmatprep.mubr.f32.mxu0 %v1833_v0  ;;  %378 = vmatprep.mubr.f32.mxu1 %v1833_v0  ;;  %v250_v3 = vld [vmem:[#allocation5] sm:$0xff]  ;;  %v1914_v4 = vpack.c.bf16 %v253_v2, %v251_v1  ;;  %v252_v5 = vld [vmem:[#allocation5 + $0x10] sm:$0xff]  ;;  %v255_v6 = vld [vmem:[#allocation5 + $0x28] sm:$0xff] }
  0x38   :  { %v257_v7 = vld [vmem:[#allocation5 + $0x38] sm:$0xff]  ;;  %v1916_v8 = vpack.c.bf16 %v252_v5, %v250_v3  ;;  %v254_v10 = vld [vmem:[#allocation5 + $0x20] sm:$0xff]  ;;  %v256_v11 = vld [vmem:[#allocation5 + $0x30] sm:$0xff] }
  0x39   :  { %v1918_v9 = vpack.c.bf16 %v257_v7, %v255_v6  ;;  %v259_v12 = vld [vmem:[#allocation5 + $0x48] sm:$0xff]  ;;  %1141 = vmatprep.subr.bf16.mxu1 %v1914_v4  ;;  %v261_v13 = vld [vmem:[#allocation5 + $0x58] sm:$0xff]  ;;  %v1922_v14 = vpack.c.bf16 %v256_v11, %v254_v10  ;;  %v258_v16 = vld [vmem:[#allocation5 + $0x40] sm:$0xff] }
  0x3a   :  { %1143 = vmatpush1.bf16.msra.mxu1 %v1916_v8  ;;  %v1925_v15 = vpack.c.bf16 %v261_v13, %v259_v12  ;;  %v260_v17 = vld [vmem:[#allocation5 + $0x50] sm:$0xff]  ;;  %v263_v18 = vld [vmem:[#allocation5 + $0x68] sm:$0xff]  ;;  %v265_v19 = vld [vmem:[#allocation5 + $0x78] sm:$0xff] }
  0x3b   :  { %1145 = vmatprep.subr.bf16.mxu1 %v1918_v9  ;;  %v1928_v20 = vpack.c.bf16 %v260_v17, %v258_v16  ;;  %v1931_v21 = vpack.c.bf16 %v265_v19, %v263_v18  ;;  %v262_v22 = vld [vmem:[#allocation5 + $0x60] sm:$0xff]  ;;  %v264_v23 = vld [vmem:[#allocation5 + $0x70] sm:$0xff]  ;;  %v267_v24 = vld [vmem:[#allocation5 + $0x88] sm:$0xff] }
  0x3c   :  { %v269_v25 = vld [vmem:[#allocation5 + $0x98] sm:$0xff]  ;;  %v73_v26 = vld [vmem:[#allocation3 + $0x8] sm:$0xff]  ;;  %v72_v29 = vld [vmem:[#allocation3] sm:$0xff]  ;;  %v1934_v31 = vpack.c.bf16 %v264_v23, %v262_v22 }
  0x3d   :  { %v75_v27 = vld [vmem:[#allocation3 + $0x18] sm:$0xff]  ;;  %v74_v30 = vld [vmem:[#allocation3 + $0x10] sm:$0xff]  ;;  %v266_v32 = vld [vmem:[#allocation5 + $0x80] sm:$0xff]  ;;  %v1937_v35 = vpack.c.bf16 %v269_v25, %v267_v24 }
  0x3e   :  { %1147 = vmatpush1.bf16.msra.mxu1 %v1922_v14  ;;  %v1108_v28 = vpack.c.bf16 %v75_v27, %v73_v26  ;;  %v1110_v33 = vpack.c.bf16 %v74_v30, %v72_v29  ;;  %v77_v34 = vld [vmem:[#allocation3 + $0x28] sm:$0xff]  ;;  %v268_v36 = vld [vmem:[#allocation5 + $0x90] sm:$0xff]  ;;  %v79_v38 = vld [vmem:[#allocation3 + $0x38] sm:$0xff] }
  0x3f   :  { %1149 = vmatprep.subr.bf16.mxu1 %v1925_v15  ;;  %v271_v37 = vld [vmem:[#allocation5 + $0xa8] sm:$0xff]  ;;  %v273_v39 = vld [vmem:[#allocation5 + $0xb8] sm:$0xff]  ;;  %v1112_v40 = vpack.c.bf16 %v79_v38, %v77_v34  ;;  %v76_v41 = vld [vmem:[#allocation3 + $0x20] sm:$0xff]  ;;  %v1940_v46 = vpack.c.bf16 %v268_v36, %v266_v32 }
  0x40   :  { %1109 = vmatprep.subr.bf16.mxu0 %v1108_v28  ;;  %v78_v42 = vld [vmem:[#allocation3 + $0x30] sm:$0xff]  ;;  %v81_v44 = vld [vmem:[#allocation3 + $0x48] sm:$0xff]  ;;  %v83_v45 = vld [vmem:[#allocation3 + $0x58] sm:$0xff]  ;;  %v1943_v50 = vpack.c.bf16 %v273_v39, %v271_v37 }
  0x41   :  { %1111 = vmatpush1.bf16.msra.mxu0 %v1110_v33  ;;  %v1114_v43 = vpack.c.bf16 %v78_v42, %v76_v41  ;;  %v270_v47 = vld [vmem:[#allocation5 + $0xa0] sm:$0xff]  ;;  %v1116_v48 = vpack.c.bf16 %v83_v45, %v81_v44  ;;  %v272_v51 = vld [vmem:[#allocation5 + $0xb0] sm:$0xff]  ;;  %v275_v52 = vld [vmem:[#allocation5 + $0xc8] sm:$0xff] }
  0x42   :  { %1151 = vmatpush1.bf16.msra.mxu1 %v1928_v20  ;;  %1113 = vmatprep.subr.bf16.mxu0 %v1112_v40  ;;  %v80_v49 = vld [vmem:[#allocation3 + $0x40] sm:$0xff]  ;;  %v82_v53 = vld [vmem:[#allocation3 + $0x50] sm:$0xff]  ;;  %v277_v54 = vld [vmem:[#allocation5 + $0xd8] sm:$0xff]  ;;  %v1946_v61 = vpack.c.bf16 %v272_v51, %v270_v47 }
  0x43   :  { %1153 = vmatprep.subr.bf16.mxu1 %v1931_v21  ;;  %v1118_v55 = vpack.c.bf16 %v82_v53, %v80_v49  ;;  %v85_v56 = vld [vmem:[#allocation3 + $0x68] sm:$0xff]  ;;  %v87_v57 = vld [vmem:[#allocation3 + $0x78] sm:$0xff]  ;;  %v84_v59 = vld [vmem:[#allocation3 + $0x60] sm:$0xff]  ;;  %v1949_v63 = vpack.c.bf16 %v277_v54, %v275_v52 }
  0x44   :  { %v1120_v58 = vpack.c.bf16 %v87_v57, %v85_v56  ;;  %v86_v60 = vld [vmem:[#allocation3 + $0x70] sm:$0xff]  ;;  %v89_v62 = vld [vmem:[#allocation3 + $0x88] sm:$0xff]  ;;  %v274_v1 = vld [vmem:[#allocation5 + $0xc0] sm:$0xff] }
  0x45   :  { %1115 = vmatpush1.bf16.msra.mxu0 %v1114_v43  ;;  %v276_v2 = vld [vmem:[#allocation5 + $0xd0] sm:$0xff]  ;;  %v91_v3 = vld [vmem:[#allocation3 + $0x98] sm:$0xff]  ;;  %v279_v5 = vld [vmem:[#allocation5 + $0xe8] sm:$0xff]  ;;  %v1122_v7 = vpack.c.bf16 %v86_v60, %v84_v59 }
  0x46   :  { %1155 = vmatpush1.bf16.msra.mxu1 %v1934_v31  ;;  %1117 = vmatprep.subr.bf16.mxu0 %v1116_v48  ;;  %v281_v6 = vld [vmem:[#allocation5 + $0xf8] sm:$0xff]  ;;  %v1124_v10 = vpack.c.bf16 %v91_v3, %v89_v62  ;;  %v88_v11 = vld [vmem:[#allocation3 + $0x80] sm:$0xff]  ;;  %v90_v12 = vld [vmem:[#allocation3 + $0x90] sm:$0xff]  ;;  %v1952_v13 = vpack.c.bf16 %v276_v2, %v274_v1 }
  0x47   :  { %1157 = vmatprep.subr.bf16.mxu1 %v1937_v35  ;;  %v93_v16 = vld [vmem:[#allocation3 + $0xa8] sm:$0xff]  ;;  %v95_v17 = vld [vmem:[#allocation3 + $0xb8] sm:$0xff]  ;;  %v1955_v18 = vpack.c.bf16 %v281_v6, %v279_v5  ;;  %v278_v19 = vld [vmem:[#allocation5 + $0xe0] sm:$0xff]  ;;  %v1126_v25 = vpack.c.bf16 %v90_v12, %v88_v11 }
  0x48   :  { %v280_v22 = vld [vmem:[#allocation5 + $0xf0] sm:$0xff]  ;;  %v283_v23 = vld [vmem:[#allocation5 + $0x108] sm:$0xff]  ;;  %v285_v24 = vld [vmem:[#allocation5 + $0x118] sm:$0xff]  ;;  %v1128_v26 = vpack.c.bf16 %v95_v17, %v93_v16 }
  0x49   :  { %1119 = vmatpush1.bf16.msra.mxu0 %v1118_v55  ;;  %v92_v27 = vld [vmem:[#allocation3 + $0xa0] sm:$0xff]  ;;  %v94_v28 = vld [vmem:[#allocation3 + $0xb0] sm:$0xff]  ;;  %v1958_v29 = vpack.c.bf16 %v280_v22, %v278_v19  ;;  %v97_v30 = vld [vmem:[#allocation3 + $0xc8] sm:$0xff]  ;;  %v1961_v33 = vpack.c.bf16 %v285_v24, %v283_v23 }
  0x4a   :  { %1159 = vmatpush1.bf16.msra.mxu1 %v1940_v46  ;;  %1121 = vmatprep.subr.bf16.mxu0 %v1120_v58  ;;  %v99_v32 = vld [vmem:[#allocation3 + $0xd8] sm:$0xff]  ;;  %v282_v34 = vld [vmem:[#allocation5 + $0x100] sm:$0xff]  ;;  %v284_v36 = vld [vmem:[#allocation5 + $0x110] sm:$0xff]  ;;  %v1130_v39 = vpack.c.bf16 %v94_v28, %v92_v27 }
  0x4b   :  { %1161 = vmatprep.subr.bf16.mxu1 %v1943_v50  ;;  %v287_v37 = vld [vmem:[#allocation5 + $0x128] sm:$0xff]  ;;  %v289_v38 = vld [vmem:[#allocation5 + $0x138] sm:$0xff]  ;;  %v1132_v40 = vpack.c.bf16 %v99_v32, %v97_v30  ;;  %v96_v41 = vld [vmem:[#allocation3 + $0xc0] sm:$0xff]  ;;  %v1964_v43 = vpack.c.bf16 %v284_v36, %v282_v34 }
  0x4c   :  { %v98_v42 = vld [vmem:[#allocation3 + $0xd0] sm:$0xff]  ;;  %v101_v44 = vld [vmem:[#allocation3 + $0xe8] sm:$0xff]  ;;  %v103_v45 = vld [vmem:[#allocation3 + $0xf8] sm:$0xff]  ;;  %v1967_v47 = vpack.c.bf16 %v289_v38, %v287_v37 }
  0x4d   :  { %1123 = vmatpush1.bf16.msra.mxu0 %v1122_v7  ;;  %v286_v48 = vld [vmem:[#allocation5 + $0x120] sm:$0xff]  ;;  %v288_v49 = vld [vmem:[#allocation5 + $0x130] sm:$0xff]  ;;  %v291_v51 = vld [vmem:[#allocation5 + $0x148] sm:$0xff]  ;;  %v1134_v53 = vpack.c.bf16 %v98_v42, %v96_v41  ;;  %v1136_v54 = vpack.c.bf16 %v103_v45, %v101_v44 }
  0x4e   :  { %1163 = vmatpush1.bf16.msra.mxu1 %v1946_v61  ;;  %1125 = vmatprep.subr.bf16.mxu0 %v1124_v10  ;;  %v293_v52 = vld [vmem:[#allocation5 + $0x158] sm:$0xff]  ;;  %v100_v55 = vld [vmem:[#allocation3 + $0xe0] sm:$0xff]  ;;  %v102_v56 = vld [vmem:[#allocation3 + $0xf0] sm:$0xff]  ;;  %v1970_v57 = vpack.c.bf16 %v288_v49, %v286_v48 }
  0x4f   :  { %1165 = vmatprep.subr.bf16.mxu1 %v1949_v63  ;;  %v1973_v58 = vpack.c.bf16 %v293_v52, %v291_v51  ;;  %v290_v59 = vld [vmem:[#allocation5 + $0x140] sm:$0xff]  ;;  %v292_v60 = vld [vmem:[#allocation5 + $0x150] sm:$0xff]  ;;  %v295_v62 = vld [vmem:[#allocation5 + $0x168] sm:$0xff]  ;;  %v1138_v2 = vpack.c.bf16 %v102_v56, %v100_v55 }
  0x50   :  { %v297_v1 = vld [vmem:[#allocation5 + $0x178] sm:$0xff]  ;;  %v1976_v3 = vpack.c.bf16 %v292_v60, %v290_v59  ;;  %v294_v6 = vld [vmem:[#allocation5 + $0x160] sm:$0xff]  ;;  %v296_v7 = vld [vmem:[#allocation5 + $0x170] sm:$0xff] }
  0x51   :  { %1127 = vmatpush1.bf16.msra.mxu0 %v1126_v25  ;;  %v1979_v5 = vpack.c.bf16 %v297_v1, %v295_v62  ;;  %v299_v10 = vld [vmem:[#allocation5 + $0x188] sm:$0xff]  ;;  %v301_v11 = vld [vmem:[#allocation5 + $0x198] sm:$0xff]  ;;  %v64_v12 = vld [vmem:[%s2295_s0] sm:$0xff]  ;;  %v1986_v16 = vpack.c.bf16 %v296_v7, %v294_v6 }
  0x52   :  { %1167 = vmatpush1.bf16.msra.mxu1 %v1952_v13  ;;  %1129 = vmatprep.subr.bf16.mxu0 %v1128_v26  ;;  %v1989_v17 = vpack.c.bf16 %v301_v11, %v299_v10  ;;  %v298_v19 = vld [vmem:[#allocation5 + $0x180] sm:$0xff]  ;;  %v300_v22 = vld [vmem:[#allocation5 + $0x190] sm:$0xff]  ;;  %v303_v23 = vld [vmem:[#allocation5 + $0x1a8] sm:$0xff] }
  0x53   :  { %1169 = vmatprep.subr.bf16.mxu1 %v1955_v18  ;;  %v305_v24 = vld [vmem:[#allocation5 + $0x1b8] sm:$0xff]  ;;  %v1995_v25 = vpack.c.bf16 %v300_v22, %v298_v19  ;;  %v302_v27 = vld [vmem:[#allocation5 + $0x1a0] sm:$0xff]  ;;  %v304_v28 = vld [vmem:[#allocation5 + $0x1b0] sm:$0xff] }
  0x54   :  { %v1998_v26 = vpack.c.bf16 %v305_v24, %v303_v23  ;;  %v307_v30 = vld [vmem:[#allocation5 + $0x1c8] sm:$0xff]  ;;  %v309_v32 = vld [vmem:[#allocation5 + $0x1d8] sm:$0xff]  ;;  %v2003_v34 = vpack.c.bf16 %v304_v28, %v302_v27  ;;  %v306_v37 = vld [vmem:[#allocation5 + $0x1c0] sm:$0xff] }
  0x55   :  { %1131 = vmatpush1.bf16.msra.mxu0 %v1130_v39  ;;  %v2006_v36 = vpack.c.bf16 %v309_v32, %v307_v30  ;;  %v308_v38 = vld [vmem:[#allocation5 + $0x1d0] sm:$0xff]  ;;  %v311_v39 = vld [vmem:[#allocation5 + $0x1e8] sm:$0xff]  ;;  %v310_v44 = vld [vmem:[#allocation5 + $0x1e0] sm:$0xff] }
  0x56   :  { %1171 = vmatpush1.bf16.msra.mxu1 %v1958_v29  ;;  %1133 = vmatprep.subr.bf16.mxu0 %v1132_v40  ;;  %v313_v40 = vld [vmem:[#allocation5 + $0x1f8] sm:$0xff]  ;;  %v2011_v41 = vpack.c.bf16 %v308_v38, %v306_v37  ;;  %v312_v45 = vld [vmem:[#allocation5 + $0x1f0] sm:$0xff]  ;;  %v65_v49 = vld [vmem:[%s2295_s0 + $0x8] sm:$0xff] }
  0x57   :  { %1173 = vmatprep.subr.bf16.mxu1 %v1961_v33  ;;  %v2014_v42 = vpack.c.bf16 %v313_v40, %v311_v39  ;;  %v2019_v48 = vpack.c.bf16 %v312_v45, %v310_v44  ;;  %v104_v56 = vld [vmem:[%s2299_s4] sm:$0x3]  ;;  %v66_v24 = vld [vmem:[%s2295_s0 + $0x10] sm:$0xff] }
  0x59   :  { %1135 = vmatpush1.bf16.msra.mxu0 %v1134_v53  ;;  %v106_v53 = vlaneseq }
  0x5a   :  { %1175 = vmatpush1.bf16.msra.mxu1 %v1964_v43  ;;  %1137 = vmatprep.subr.bf16.mxu0 %v1136_v54 }
  0x5b   :  { %1177 = vmatprep.subr.bf16.mxu1 %v1967_v47  ;;  %v107_v54 = vshrl.u32 %v106_v53, 7 }
  0x5d   :  { %1139 = vmatpush1.bf16.msra.mxu0 %v1138_v2  ;;  %v108_v55 = vsub.s32 0, %v107_v54  ;;  %v112_v59 = vsub.s32 1, %v107_v54 }
  0x5e   :  { %1179 = vmatpush1.bf16.msra.mxu1 %v1970_v57  ;;  %1397 = vmatprep.subr.bf16.mxu0 %v1914_v4 }
  0x5f   :  { %1181 = vmatprep.subr.bf16.mxu1 %v1973_v58  ;;  %v2088_v60 = vrot.slane %v104_v56, %v108_v55  ;;  %v2090_v62 = vrot.slane %v104_v56, %v112_v59 }
  0x60   :  { %181 = vmatmul.mubr.f32.vlgmr.msra.gmra.mrb[0].mxu0 %v64_v12 }
  0x61   :  { %186 = vmatprep.mubr.f32.mxu0 %v1833_v0  ;;  %1399 = vmatpush1.bf16.msra.mxu0 %v1916_v8 }
  0x62   :  { %1183 = vmatpush1.bf16.msra.mxu1 %v1976_v3  ;;  %1401 = vmatprep.subr.bf16.mxu0 %v1918_v9 }
  0x63   :  { %1185 = vmatprep.subr.bf16.mxu1 %v1979_v5 }
  0x64   :  { %187 = vmatmul.mubr.f32.gmra.mrb[2].mxu0 %v65_v49  ;;  %v67_v49 = vld [vmem:[%s2295_s0 + $0x18] sm:$0xff] }
  0x65   :  { %1403 = vmatpush1.bf16.msra.mxu0 %v1922_v14  ;;  %192 = vmatprep.mubr.f32.mxu0 %v1833_v0 }
  0x66   :  { %1187 = vmatpush1.bf16.msra.mxu1 %v1986_v16  ;;  %1405 = vmatprep.subr.bf16.mxu0 %v1925_v15 }
  0x67   :  { %1189 = vmatprep.subr.bf16.mxu1 %v1989_v17 }
  0x68   :  { %193 = vmatmul.mubr.f32.gmra.mrb[4].mxu0 %v66_v24 }
  0x69   :  { %1407 = vmatpush1.bf16.msra.mxu0 %v1928_v20  ;;  %198 = vmatprep.mubr.f32.mxu0 %v1833_v0 }
  0x6a   :  { %1191 = vmatpush1.bf16.msra.mxu1 %v1995_v25  ;;  %1409 = vmatprep.subr.bf16.mxu0 %v1931_v21 }
  0x6b   :  { %1193 = vmatprep.subr.bf16.mxu1 %v1998_v26 }
  0x6c   :  { %199 = vmatmul.mubr.f32.gmra.mrb[6].mxu0 %v67_v49 }
  0x6d   :  { %1411 = vmatpush1.bf16.msra.mxu0 %v1934_v31  ;;  %204 = vmatprep.mubr.f32.mxu0 %v1833_v0 }
  0x6e   :  { %1195 = vmatpush1.bf16.msra.mxu1 %v2003_v34  ;;  %1413 = vmatprep.subr.bf16.mxu0 %v1937_v35 }
  0x6f   :  { %1197 = vmatprep.subr.bf16.mxu1 %v2006_v36 }
  0x71   :  { %1415 = vmatpush1.bf16.msra.mxu0 %v1940_v46 }
  0x72   :  { %1199 = vmatpush1.bf16.msra.mxu1 %v2011_v41  ;;  %1417 = vmatprep.subr.bf16.mxu0 %v1943_v50 }
  0x73   :  { %1201 = vmatprep.subr.bf16.mxu1 %v2014_v42 }
  0x75   :  { %1419 = vmatpush1.bf16.msra.mxu0 %v1946_v61 }
  0x76   :  { %1203 = vmatpush1.bf16.msra.mxu1 %v2019_v48  ;;  %1421 = vmatprep.subr.bf16.mxu0 %v1949_v63 }
  0x77   :  { %1205 = vmatprep.subr.bf16.mxu1 %v1914_v4 }
  0x79   :  { %379 = vmatmul.mubr.f32.vlgmr.msra.gmra.mrb[0].mxu1 %v1833_v0  ;;  %1423 = vmatpush1.bf16.msra.mxu0 %v1952_v13 }
  0x7a   :  { %1207 = vmatpush1.bf16.msra.mxu1 %v1916_v8  ;;  %1425 = vmatprep.subr.bf16.mxu0 %v1955_v18 }
  0x7b   :  { %1209 = vmatprep.subr.bf16.mxu1 %v1918_v9 }
  0x7d   :  { %1427 = vmatpush1.bf16.msra.mxu0 %v1958_v29 }
  0x7e   :  { %1211 = vmatpush1.bf16.msra.mxu1 %v1922_v14  ;;  %1429 = vmatprep.subr.bf16.mxu0 %v1961_v33 }
  0x7f   :  { %1213 = vmatprep.subr.bf16.mxu1 %v1925_v15 }
  0x81   :  { %1431 = vmatpush1.bf16.msra.mxu0 %v1964_v43 }
  0x82   :  { %1215 = vmatpush1.bf16.msra.mxu1 %v1928_v20  ;;  %1433 = vmatprep.subr.bf16.mxu0 %v1967_v47 }
  0x83   :  { %1217 = vmatprep.subr.bf16.mxu1 %v1931_v21 }
  0x85   :  { %1435 = vmatpush1.bf16.msra.mxu0 %v1970_v57 }
  0x86   :  { %1219 = vmatpush1.bf16.msra.mxu1 %v1934_v31  ;;  %1437 = vmatprep.subr.bf16.mxu0 %v1973_v58 }
  0x87   :  { %1221 = vmatprep.subr.bf16.mxu1 %v1937_v35 }
  0x89   :  { %1439 = vmatpush1.bf16.msra.mxu0 %v1976_v3 }
  0x8a   :  { %1223 = vmatpush1.bf16.msra.mxu1 %v1940_v46  ;;  %1441 = vmatprep.subr.bf16.mxu0 %v1979_v5 }
  0x8b   :  { %1225 = vmatprep.subr.bf16.mxu1 %v1943_v50 }
  0x8d   :  { %1443 = vmatpush1.bf16.msra.mxu0 %v1986_v16 }
  0x8e   :  { %1227 = vmatpush1.bf16.msra.mxu1 %v1946_v61  ;;  %1445 = vmatprep.subr.bf16.mxu0 %v1989_v17 }
  0x8f   :  { %1229 = vmatprep.subr.bf16.mxu1 %v1949_v63 }
  0x91   :  { %1447 = vmatpush1.bf16.msra.mxu0 %v1995_v25 }
  0x92   :  { %1231 = vmatpush1.bf16.msra.mxu1 %v1952_v13  ;;  %1449 = vmatprep.subr.bf16.mxu0 %v1998_v26 }
  0x93   :  { %1233 = vmatprep.subr.bf16.mxu1 %v1955_v18 }
  0x95   :  { %1451 = vmatpush1.bf16.msra.mxu0 %v2003_v34 }
  0x96   :  { %1235 = vmatpush1.bf16.msra.mxu1 %v1958_v29  ;;  %1453 = vmatprep.subr.bf16.mxu0 %v2006_v36 }
  0x97   :  { %1237 = vmatprep.subr.bf16.mxu1 %v1961_v33 }
  0x99   :  { %1455 = vmatpush1.bf16.msra.mxu0 %v2011_v41 }
  0x9a   :  { %1239 = vmatpush1.bf16.msra.mxu1 %v1964_v43  ;;  %1457 = vmatprep.subr.bf16.mxu0 %v2014_v42 }
  0x9b   :  { %1241 = vmatprep.subr.bf16.mxu1 %v1967_v47 }
  0x9d   :  { %1459 = vmatpush1.bf16.msra.mxu0 %v2019_v48 }
  0x9e   :  { %1243 = vmatpush1.bf16.msra.mxu1 %v1970_v57  ;;  %1461 = vmatprep.subr.bf16.mxu0 %v1914_v4 }
  0x9f   :  { %1245 = vmatprep.subr.bf16.mxu1 %v1973_v58 }
  0xa2   :  { %1247 = vmatpush1.bf16.msra.mxu1 %v1976_v3 }
  0xa3   :  { %1249 = vmatprep.subr.bf16.mxu1 %v1979_v5 }
  0xa6   :  { %1251 = vmatpush1.bf16.msra.mxu1 %v1986_v16 }
  0xa7   :  { %1253 = vmatprep.subr.bf16.mxu1 %v1989_v17 }
  0xaa   :  { %1255 = vmatpush1.bf16.msra.mxu1 %v1995_v25 }
  0xab   :  { %1257 = vmatprep.subr.bf16.mxu1 %v1998_v26 }
  0xae   :  { %1259 = vmatpush1.bf16.msra.mxu1 %v2003_v34 }
  0xaf   :  { %1261 = vmatprep.subr.bf16.mxu1 %v2006_v36 }
  0xb2   :  { %1263 = vmatpush1.bf16.msra.mxu1 %v2011_v41 }
  0xb3   :  { %1265 = vmatprep.subr.bf16.mxu1 %v2014_v42 }
  0xb6   :  { %1267 = vmatpush1.bf16.msra.mxu1 %v2019_v48 }
  0xb7   :  { %1269 = vmatprep.subr.bf16.mxu1 %v1914_v4 }
 0x133   :  { %v182_v51 = vpop.f32.mrb[0].mxu0 }
 0x134   :  { %v184_v52 = vpop.f32.mrb[1].mxu0  ;;  %v183_v1 = vadd.f32 %v182_v51, %v2088_v60  ;;  %v68_v51 = vld [vmem:[%s2295_s0 + $0x20] sm:$0xff] }
 0x135   :  { %v185_v2 = vadd.f32 %v184_v52, %v2090_v62  ;;  %205 = vmatmul.mubr.f32.gmra.mrb[8].mxu0 %v68_v51 }
 0x136   :  { %210 = vmatprep.mubr.f32.mxu0 %v1833_v0 }
 0x137   :  { %v188_v22 = vpop.f32.mrb[2].mxu0 }
 0x138   :  { %v190_v23 = vpop.f32.mrb[3].mxu0  ;;  %v189_v27 = vadd.f32 %v188_v22, %v2088_v60 }
 0x139   :  { %v191_v28 = vadd.f32 %v190_v23, %v2090_v62 }
 0x13b   :  { %v194_v44 = vpop.f32.mrb[4].mxu0 }
 0x13c   :  { %v196_v45 = vpop.f32.mrb[5].mxu0  ;;  %v195_v52 = vadd.f32 %v194_v44, %v2088_v60 }
 0x13d   :  { %v197_v53 = vadd.f32 %v196_v45, %v2090_v62 }
 0x14c   :  { %v380_v6 = vpop.f32.mrb[0].mxu1 }
 0x14d   :  { %v385_v7 = vadd.f32 %v380_v6, %v183_v1  ;;  %v382_v10 = vpop.f32.mrb[1].mxu1  ;;  %v200_v6 = vpop.f32.mrb[6].mxu0 }
 0x14e   :  { %v386_v11 = vadd.f32 %v382_v10, %v185_v2  ;;  %v69_v10 = vld [vmem:[%s2295_s0 + $0x28] sm:$0xff] }
 0x14f   :  { %211 = vmatmul.mubr.f32.gmra.mrb[10].mxu0 %v69_v10  ;;  %v959_v10 = vld [vmem:[#allocation7 + $0x50] sm:$0xff] }
 0x150   :  { %1724 = vtanh.f32 %v386_v11  ;;  %216 = vmatprep.mubr.f32.mxu0 %v1833_v0  ;;  %v70_v11 = vld [vmem:[%s2295_s0 + $0x30] sm:$0xff] }
 0x151   :  { %1726 = vtanh.f32 %v385_v7  ;;  %v202_v7 = vpop.f32.mrb[7].mxu0 }
 0x152   :  { %v203_v22 = vadd.f32 %v202_v7, %v2090_v62 }
 0x153   :  { %217 = vmatmul.mubr.f32.gmra.mrb[12].mxu0 %v70_v11  ;;  %v960_v11 = vld [vmem:[#allocation7 + $0x58] sm:$0xff] }
 0x154   :  { %222 = vmatprep.mubr.f32.mxu0 %v1833_v0 }
 0x15a   :  { %v1725_v12 = vpop.eup %1724 }
 0x15b   :  { %v1727_v19 = vpop.eup %1726  ;;  %458 = vmatprep.mubr.f32.mxu1 %v1725_v12  ;;  %v71_v12 = vld [vmem:[%s2295_s0 + $0x38] sm:$0xff] }
 0x15c   :  { %459 = vmatmul.mubr.f32.vlgmr.msra.gmra.mrb[2].mxu1 %v1727_v19  ;;  %223 = vmatmul.mubr.f32.gmra.mrb[14].mxu0 %v71_v12  ;;  %v201_v19 = vadd.f32 %v200_v6, %v2088_v60  ;;  %v976_v6 = vld [vmem:[#allocation7 + $0xd8] sm:$0xff]  ;;  %v1674_v12 = vpack.c.bf16 %v960_v11, %v959_v10 }
 0x15d   :  { %1271 = vmatpush1.bf16.msra.mxu1 %v1916_v8 }
 0x15e   :  { %1273 = vmatprep.subr.bf16.mxu1 %v1918_v9 }
 0x161   :  { %1275 = vmatpush1.bf16.msra.mxu1 %v1922_v14 }
 0x162   :  { %1277 = vmatprep.subr.bf16.mxu1 %v1925_v15 }
 0x165   :  { %1279 = vmatpush1.bf16.msra.mxu1 %v1928_v20 }
 0x166   :  { %1281 = vmatprep.subr.bf16.mxu1 %v1931_v21 }
 0x169   :  { %1283 = vmatpush1.bf16.msra.mxu1 %v1934_v31 }
 0x16a   :  { %1285 = vmatprep.subr.bf16.mxu1 %v1937_v35 }
 0x16d   :  { %1287 = vmatpush1.bf16.msra.mxu1 %v1940_v46 }
 0x16e   :  { %1289 = vmatprep.subr.bf16.mxu1 %v1943_v50 }
 0x171   :  { %1291 = vmatpush1.bf16.msra.mxu1 %v1946_v61 }
 0x172   :  { %1293 = vmatprep.subr.bf16.mxu1 %v1949_v63 }
 0x175   :  { %1295 = vmatpush1.bf16.msra.mxu1 %v1952_v13 }
 0x176   :  { %1297 = vmatprep.subr.bf16.mxu1 %v1955_v18 }
 0x179   :  { %1299 = vmatpush1.bf16.msra.mxu1 %v1958_v29 }
 0x17a   :  { %1301 = vmatprep.subr.bf16.mxu1 %v1961_v33 }
 0x17d   :  { %1303 = vmatpush1.bf16.msra.mxu1 %v1964_v43 }
 0x17e   :  { %1305 = vmatprep.subr.bf16.mxu1 %v1967_v47 }
 0x181   :  { %1307 = vmatpush1.bf16.msra.mxu1 %v1970_v57 }
 0x182   :  { %1309 = vmatprep.subr.bf16.mxu1 %v1973_v58 }
 0x185   :  { %1311 = vmatpush1.bf16.msra.mxu1 %v1976_v3 }
 0x186   :  { %1313 = vmatprep.subr.bf16.mxu1 %v1979_v5 }
 0x189   :  { %1315 = vmatpush1.bf16.msra.mxu1 %v1986_v16 }
 0x18a   :  { %1317 = vmatprep.subr.bf16.mxu1 %v1989_v17 }
 0x18d   :  { %1319 = vmatpush1.bf16.msra.mxu1 %v1995_v25 }
 0x18e   :  { %1321 = vmatprep.subr.bf16.mxu1 %v1998_v26 }
 0x191   :  { %1323 = vmatpush1.bf16.msra.mxu1 %v2003_v34 }
 0x192   :  { %1325 = vmatprep.subr.bf16.mxu1 %v2006_v36 }
 0x195   :  { %1327 = vmatpush1.bf16.msra.mxu1 %v2011_v41 }
 0x196   :  { %1329 = vmatprep.subr.bf16.mxu1 %v2014_v42 }
 0x199   :  { %1331 = vmatpush1.bf16.msra.mxu1 %v2019_v48 }
 0x19a   :  { %1333 = vmatprep.subr.bf16.mxu1 %v1914_v4 }
 0x22f   :  { %v460_v30 = vpop.f32.mrb[2].mxu1 }
 0x230   :  { %v465_v32 = vadd.f32 %v460_v30, %v189_v27  ;;  %v462_v37 = vpop.f32.mrb[3].mxu1 }
 0x231   :  { %v466_v38 = vadd.f32 %v462_v37, %v191_v28 }
 0x233   :  { %1728 = vtanh.f32 %v466_v38 }
 0x234   :  { %1730 = vtanh.f32 %v465_v32 }
 0x23d   :  { %v1729_v39 = vpop.eup %1728 }
 0x23e   :  { %v1731_v40 = vpop.eup %1730  ;;  %538 = vmatprep.mubr.f32.mxu1 %v1729_v39 }
 0x23f   :  { %539 = vmatmul.mubr.f32.vlgmr.msra.gmra.mrb[4].mxu1 %v1731_v40 }
 0x240   :  { %1335 = vmatpush1.bf16.msra.mxu1 %v1916_v8 }
 0x241   :  { %1337 = vmatprep.subr.bf16.mxu1 %v1918_v9 }
 0x244   :  { %1339 = vmatpush1.bf16.msra.mxu1 %v1922_v14 }
 0x245   :  { %1341 = vmatprep.subr.bf16.mxu1 %v1925_v15 }
 0x248   :  { %1343 = vmatpush1.bf16.msra.mxu1 %v1928_v20 }
 0x249   :  { %1345 = vmatprep.subr.bf16.mxu1 %v1931_v21 }
 0x24c   :  { %1347 = vmatpush1.bf16.msra.mxu1 %v1934_v31 }
 0x24d   :  { %1349 = vmatprep.subr.bf16.mxu1 %v1937_v35 }
 0x250   :  { %1351 = vmatpush1.bf16.msra.mxu1 %v1940_v46 }
 0x251   :  { %1353 = vmatprep.subr.bf16.mxu1 %v1943_v50 }
 0x254   :  { %1355 = vmatpush1.bf16.msra.mxu1 %v1946_v61 }
 0x255   :  { %1357 = vmatprep.subr.bf16.mxu1 %v1949_v63 }
 0x258   :  { %1359 = vmatpush1.bf16.msra.mxu1 %v1952_v13 }
 0x259   :  { %1361 = vmatprep.subr.bf16.mxu1 %v1955_v18 }
 0x25c   :  { %1363 = vmatpush1.bf16.msra.mxu1 %v1958_v29 }
 0x25d   :  { %1365 = vmatprep.subr.bf16.mxu1 %v1961_v33 }
 0x260   :  { %1367 = vmatpush1.bf16.msra.mxu1 %v1964_v43 }
 0x261   :  { %1369 = vmatprep.subr.bf16.mxu1 %v1967_v47 }
 0x264   :  { %1371 = vmatpush1.bf16.msra.mxu1 %v1970_v57 }
 0x265   :  { %1373 = vmatprep.subr.bf16.mxu1 %v1973_v58 }
 0x268   :  { %1375 = vmatpush1.bf16.msra.mxu1 %v1976_v3 }
 0x269   :  { %1377 = vmatprep.subr.bf16.mxu1 %v1979_v5 }
 0x26c   :  { %1379 = vmatpush1.bf16.msra.mxu1 %v1986_v16 }
 0x26d   :  { %1381 = vmatprep.subr.bf16.mxu1 %v1989_v17 }
 0x270   :  { %1383 = vmatpush1.bf16.msra.mxu1 %v1995_v25 }
 0x271   :  { %1385 = vmatprep.subr.bf16.mxu1 %v1998_v26 }
 0x274   :  { %1387 = vmatpush1.bf16.msra.mxu1 %v2003_v34 }
 0x275   :  { %1389 = vmatprep.subr.bf16.mxu1 %v2006_v36 }
 0x278   :  { %1391 = vmatpush1.bf16.msra.mxu1 %v2011_v41 }
 0x279   :  { %1393 = vmatprep.subr.bf16.mxu1 %v2014_v42 }
 0x27c   :  { %1395 = vmatpush1.bf16.msra.mxu1 %v2019_v48 }
 0x312   :  { %v540_v54 = vpop.f32.mrb[4].mxu1 }
 0x313   :  { %v545_v55 = vadd.f32 %v540_v54, %v195_v52  ;;  %v542_v56 = vpop.f32.mrb[5].mxu1 }
 0x314   :  { %v546_v59 = vadd.f32 %v542_v56, %v197_v53  ;;  %v957_v56 = vld [vmem:[#allocation7 + $0x40] sm:$0xff] }
 0x316   :  { %1732 = vtanh.f32 %v546_v59  ;;  %v958_v59 = vld [vmem:[#allocation7 + $0x48] sm:$0xff] }
 0x317   :  { %1734 = vtanh.f32 %v545_v55 }
 0x320   :  { %v1733_v1 = vpop.eup %1732 }
 0x321   :  { %v1735_v2 = vpop.eup %1734  ;;  %618 = vmatprep.mubr.f32.mxu1 %v1733_v1  ;;  %v1670_v1 = vpack.c.bf16 %v958_v59, %v957_v56 }
 0x322   :  { %619 = vmatmul.mubr.f32.vlgmr.msra.gmra.mrb[6].mxu1 %v1735_v2  ;;  %v975_v2 = vld [vmem:[#allocation7 + $0xd0] sm:$0xff] }
 0x323   :  { %v1672_v7 = vpack.c.bf16 %v976_v6, %v975_v2 }
 0x3f5   :  { %v620_v23 = vpop.f32.mrb[6].mxu1 }
 0x3f6   :  { %v625_v24 = vadd.f32 %v620_v23, %v201_v19  ;;  %v622_v27 = vpop.f32.mrb[7].mxu1  ;;  %v977_v19 = vld [vmem:[#allocation7 + $0xe0] sm:$0xff] }
 0x3f7   :  { %v626_v28 = vadd.f32 %v622_v27, %v203_v22  ;;  %v978_v22 = vld [vmem:[#allocation7 + $0xe8] sm:$0xff]  ;;  %v961_v23 = vld [vmem:[#allocation7 + $0x60] sm:$0xff] }
 0x3f8   :  { %v962_v27 = vld [vmem:[#allocation7 + $0x68] sm:$0xff] }
 0x3f9   :  { %1736 = vtanh.f32 %v626_v28  ;;  %v979_v28 = vld [vmem:[#allocation7 + $0xf0] sm:$0xff] }
 0x3fa   :  { %1738 = vtanh.f32 %v625_v24  ;;  %v1676_v24 = vpack.c.bf16 %v978_v22, %v977_v19 }
 0x403   :  { %v1737_v30 = vpop.eup %1736 }
 0x404   :  { %v1739_v32 = vpop.eup %1738  ;;  %698 = vmatprep.mubr.f32.mxu0 %v1737_v30  ;;  %v980_v30 = vld [vmem:[#allocation7 + $0xf8] sm:$0xff] }
 0x405   :  { %699 = vmatmul.mubr.f32.vlgmr.msra.gmra.mrb[8].mxu0 %v1739_v32  ;;  %v1678_v32 = vpack.c.bf16 %v962_v27, %v961_v23 }
 0x406   :  { %1463 = vmatpush1.bf16.msra.mxu0 %v1916_v8 }
 0x407   :  { %1465 = vmatprep.subr.bf16.mxu0 %v1918_v9 }
 0x40a   :  { %1467 = vmatpush1.bf16.msra.mxu0 %v1922_v14 }
 0x40b   :  { %1469 = vmatprep.subr.bf16.mxu0 %v1925_v15 }
 0x40e   :  { %1471 = vmatpush1.bf16.msra.mxu0 %v1928_v20 }
 0x40f   :  { %1473 = vmatprep.subr.bf16.mxu0 %v1931_v21 }
 0x412   :  { %1475 = vmatpush1.bf16.msra.mxu0 %v1934_v31 }
 0x413   :  { %1477 = vmatprep.subr.bf16.mxu0 %v1937_v35 }
 0x416   :  { %1479 = vmatpush1.bf16.msra.mxu0 %v1940_v46 }
 0x417   :  { %1481 = vmatprep.subr.bf16.mxu0 %v1943_v50 }
 0x41a   :  { %1483 = vmatpush1.bf16.msra.mxu0 %v1946_v61 }
 0x41b   :  { %1485 = vmatprep.subr.bf16.mxu0 %v1949_v63 }
 0x41e   :  { %1487 = vmatpush1.bf16.msra.mxu0 %v1952_v13 }
 0x41f   :  { %1489 = vmatprep.subr.bf16.mxu0 %v1955_v18 }
 0x422   :  { %1491 = vmatpush1.bf16.msra.mxu0 %v1958_v29 }
 0x423   :  { %1493 = vmatprep.subr.bf16.mxu0 %v1961_v33 }
 0x426   :  { %1495 = vmatpush1.bf16.msra.mxu0 %v1964_v43 }
 0x427   :  { %1497 = vmatprep.subr.bf16.mxu0 %v1967_v47 }
 0x42a   :  { %1499 = vmatpush1.bf16.msra.mxu0 %v1970_v57 }
 0x42b   :  { %1501 = vmatprep.subr.bf16.mxu0 %v1973_v58 }
 0x42e   :  { %1503 = vmatpush1.bf16.msra.mxu0 %v1976_v3 }
 0x42f   :  { %1505 = vmatprep.subr.bf16.mxu0 %v1979_v5 }
 0x432   :  { %1507 = vmatpush1.bf16.msra.mxu0 %v1986_v16 }
 0x433   :  { %1509 = vmatprep.subr.bf16.mxu0 %v1989_v17 }
 0x436   :  { %1511 = vmatpush1.bf16.msra.mxu0 %v1995_v25 }
 0x437   :  { %1513 = vmatprep.subr.bf16.mxu0 %v1998_v26 }
 0x43a   :  { %1515 = vmatpush1.bf16.msra.mxu0 %v2003_v34 }
 0x43b   :  { %1517 = vmatprep.subr.bf16.mxu0 %v2006_v36 }
 0x43e   :  { %1519 = vmatpush1.bf16.msra.mxu0 %v2011_v41 }
 0x43f   :  { %1521 = vmatprep.subr.bf16.mxu0 %v2014_v42 }
 0x442   :  { %1523 = vmatpush1.bf16.msra.mxu0 %v2019_v48 }
 0x443   :  { %1525 = vmatprep.subr.bf16.mxu0 %v1914_v4 }
 0x4d8   :  { %v700_v0 = vpop.f32.mrb[8].mxu0 }
 0x4d9   :  { %v1700_v37 = vadd.f32 %v700_v0, %v2088_v60  ;;  %v702_v38 = vpop.f32.mrb[9].mxu0  ;;  %v1680_v0 = vpack.c.bf16 %v980_v30, %v979_v28 }
 0x4da   :  { %v1701_v39 = vadd.f32 %v702_v38, %v2090_v62  ;;  %v964_v38 = vld [vmem:[#allocation7 + $0x78] sm:$0xff] }
 0x4dc   :  { %1740 = vtanh.f32 %v1701_v39 }
 0x4dd   :  { %1742 = vtanh.f32 %v1700_v37  ;;  %v963_v37 = vld [vmem:[#allocation7 + $0x70] sm:$0xff] }
 0x4de   :  { %v1682_v39 = vpack.c.bf16 %v964_v38, %v963_v37 }
 0x4e6   :  { %v1741_v40 = vpop.eup %1740 }
 0x4e7   :  { %v1743_v44 = vpop.eup %1742  ;;  %778 = vmatprep.mubr.f32.mxu0 %v1741_v40 }
 0x4e8   :  { %779 = vmatmul.mubr.f32.vlgmr.msra.gmra.mrb[10].mxu0 %v1743_v44 }
 0x4e9   :  { %1527 = vmatpush1.bf16.msra.mxu0 %v1916_v8 }
 0x4ea   :  { %1529 = vmatprep.subr.bf16.mxu0 %v1918_v9 }
 0x4ed   :  { %1531 = vmatpush1.bf16.msra.mxu0 %v1922_v14 }
 0x4ee   :  { %1533 = vmatprep.subr.bf16.mxu0 %v1925_v15 }
 0x4f1   :  { %1535 = vmatpush1.bf16.msra.mxu0 %v1928_v20 }
 0x4f2   :  { %1537 = vmatprep.subr.bf16.mxu0 %v1931_v21 }
 0x4f5   :  { %1539 = vmatpush1.bf16.msra.mxu0 %v1934_v31 }
 0x4f6   :  { %1541 = vmatprep.subr.bf16.mxu0 %v1937_v35 }
 0x4f9   :  { %1543 = vmatpush1.bf16.msra.mxu0 %v1940_v46 }
 0x4fa   :  { %1545 = vmatprep.subr.bf16.mxu0 %v1943_v50 }
 0x4fd   :  { %1547 = vmatpush1.bf16.msra.mxu0 %v1946_v61 }
 0x4fe   :  { %1549 = vmatprep.subr.bf16.mxu0 %v1949_v63 }
 0x501   :  { %1551 = vmatpush1.bf16.msra.mxu0 %v1952_v13 }
 0x502   :  { %1553 = vmatprep.subr.bf16.mxu0 %v1955_v18 }
 0x505   :  { %1555 = vmatpush1.bf16.msra.mxu0 %v1958_v29 }
 0x506   :  { %1557 = vmatprep.subr.bf16.mxu0 %v1961_v33 }
 0x509   :  { %1559 = vmatpush1.bf16.msra.mxu0 %v1964_v43 }
 0x50a   :  { %1561 = vmatprep.subr.bf16.mxu0 %v1967_v47 }
 0x50d   :  { %1563 = vmatpush1.bf16.msra.mxu0 %v1970_v57 }
 0x50e   :  { %1565 = vmatprep.subr.bf16.mxu0 %v1973_v58 }
 0x511   :  { %1567 = vmatpush1.bf16.msra.mxu0 %v1976_v3 }
 0x512   :  { %1569 = vmatprep.subr.bf16.mxu0 %v1979_v5 }
 0x515   :  { %1571 = vmatpush1.bf16.msra.mxu0 %v1986_v16 }
 0x516   :  { %1573 = vmatprep.subr.bf16.mxu0 %v1989_v17 }
 0x519   :  { %1575 = vmatpush1.bf16.msra.mxu0 %v1995_v25 }
 0x51a   :  { %1577 = vmatprep.subr.bf16.mxu0 %v1998_v26 }
 0x51d   :  { %1579 = vmatpush1.bf16.msra.mxu0 %v2003_v34 }
 0x51e   :  { %1581 = vmatprep.subr.bf16.mxu0 %v2006_v36 }
 0x521   :  { %1583 = vmatpush1.bf16.msra.mxu0 %v2011_v41 }
 0x522   :  { %1585 = vmatprep.subr.bf16.mxu0 %v2014_v42 }
 0x525   :  { %1587 = vmatpush1.bf16.msra.mxu0 %v2019_v48 }
 0x526   :  { %1589 = vmatprep.subr.bf16.mxu0 %v1914_v4  ;;  %v965_v4 = vld [vmem:[#allocation7 + $0x80] sm:$0xff] }
 0x5bb   :  { %v780_v45 = vpop.f32.mrb[10].mxu0 }
 0x5bc   :  { %v1702_v49 = vadd.f32 %v780_v45, %v2088_v60  ;;  %v782_v51 = vpop.f32.mrb[11].mxu0 }
 0x5bd   :  { %v1703_v52 = vadd.f32 %v782_v51, %v2090_v62 }
 0x5bf   :  { %1744 = vtanh.f32 %v1703_v52 }
 0x5c0   :  { %1746 = vtanh.f32 %v1702_v49 }
 0x5c9   :  { %v1745_v53 = vpop.eup %1744 }
 0x5ca   :  { %v1747_v54 = vpop.eup %1746  ;;  %858 = vmatprep.mubr.f32.mxu0 %v1745_v53 }
 0x5cb   :  { %859 = vmatmul.mubr.f32.vlgmr.msra.gmra.mrb[12].mxu0 %v1747_v54  ;;  %v1072_v54 = vld [vmem:[%s2300_s5] ss:$0 sm:$0xff] }
 0x5cc   :  { %1591 = vmatpush1.bf16.msra.mxu0 %v1916_v8  ;;  %v966_v8 = vld [vmem:[#allocation7 + $0x88] sm:$0xff] }
 0x5cd   :  { %1593 = vmatprep.subr.bf16.mxu0 %v1918_v9  ;;  %v949_v9 = vld [vmem:[#allocation7] sm:$0xff] }
 0x5d0   :  { %1595 = vmatpush1.bf16.msra.mxu0 %v1922_v14  ;;  %v1652_v14 = vpack.c.bf16 %v966_v8, %v965_v4 }
 0x5d1   :  { %1597 = vmatprep.subr.bf16.mxu0 %v1925_v15  ;;  %v950_v15 = vld [vmem:[#allocation7 + $0x8] sm:$0xff] }
 0x5d2   :  { %1653 = vmatprep.subr.bf16.mxu1 %v1652_v14 }
 0x5d4   :  { %1599 = vmatpush1.bf16.msra.mxu0 %v1928_v20  ;;  %v967_v20 = vld [vmem:[#allocation7 + $0x90] sm:$0xff] }
 0x5d5   :  { %1601 = vmatprep.subr.bf16.mxu0 %v1931_v21  ;;  %v968_v21 = vld [vmem:[#allocation7 + $0x98] sm:$0xff] }
 0x5d8   :  { %1603 = vmatpush1.bf16.msra.mxu0 %v1934_v31  ;;  %v1654_v31 = vpack.c.bf16 %v950_v15, %v949_v9 }
 0x5d9   :  { %1605 = vmatprep.subr.bf16.mxu0 %v1937_v35  ;;  %v1656_v35 = vpack.c.bf16 %v968_v21, %v967_v20 }
 0x5da   :  { %1655 = vmatpush3.bf16.msra.mxu1 %v1654_v31 }
 0x5db   :  { %1657 = vmatprep.subr.bf16.mxu1 %v1656_v35 }
 0x5dc   :  { %1607 = vmatpush1.bf16.msra.mxu0 %v1940_v46  ;;  %v951_v46 = vld [vmem:[#allocation7 + $0x10] sm:$0xff] }
 0x5dd   :  { %1609 = vmatprep.subr.bf16.mxu0 %v1943_v50  ;;  %v952_v50 = vld [vmem:[#allocation7 + $0x18] sm:$0xff] }
 0x5e0   :  { %1611 = vmatpush1.bf16.msra.mxu0 %v1946_v61  ;;  %v969_v61 = vld [vmem:[#allocation7 + $0xa0] sm:$0xff] }
 0x5e1   :  { %1613 = vmatprep.subr.bf16.mxu0 %v1949_v63  ;;  %v970_v63 = vld [vmem:[#allocation7 + $0xa8] sm:$0xff] }
 0x5e4   :  { %1615 = vmatpush1.bf16.msra.mxu0 %v1952_v13  ;;  %v1658_v13 = vpack.c.bf16 %v952_v50, %v951_v46 }
 0x5e5   :  { %1617 = vmatprep.subr.bf16.mxu0 %v1955_v18  ;;  %v1660_v18 = vpack.c.bf16 %v970_v63, %v969_v61 }
 0x5e6   :  { %1659 = vmatpush3.bf16.msra.mxu1 %v1658_v13 }
 0x5e7   :  { %1661 = vmatprep.subr.bf16.mxu1 %v1660_v18 }
 0x5e8   :  { %1619 = vmatpush1.bf16.msra.mxu0 %v1958_v29  ;;  %v953_v29 = vld [vmem:[#allocation7 + $0x20] sm:$0xff] }
 0x5e9   :  { %1621 = vmatprep.subr.bf16.mxu0 %v1961_v33  ;;  %v954_v33 = vld [vmem:[#allocation7 + $0x28] sm:$0xff] }
 0x5ec   :  { %1623 = vmatpush1.bf16.msra.mxu0 %v1964_v43  ;;  %v971_v43 = vld [vmem:[#allocation7 + $0xb0] sm:$0xff] }
 0x5ed   :  { %1625 = vmatprep.subr.bf16.mxu0 %v1967_v47  ;;  %v972_v47 = vld [vmem:[#allocation7 + $0xb8] sm:$0xff] }
 0x5f0   :  { %1627 = vmatpush1.bf16.msra.mxu0 %v1970_v57  ;;  %v1662_v57 = vpack.c.bf16 %v954_v33, %v953_v29 }
 0x5f1   :  { %1629 = vmatprep.subr.bf16.mxu0 %v1973_v58  ;;  %v1664_v58 = vpack.c.bf16 %v972_v47, %v971_v43 }
 0x5f2   :  { %1663 = vmatpush3.bf16.msra.mxu1 %v1662_v57 }
 0x5f3   :  { %1665 = vmatprep.subr.bf16.mxu1 %v1664_v58 }
 0x5f4   :  { %1631 = vmatpush1.bf16.msra.mxu0 %v1976_v3  ;;  %v955_v3 = vld [vmem:[#allocation7 + $0x30] sm:$0xff] }
 0x5f5   :  { %1633 = vmatprep.subr.bf16.mxu0 %v1979_v5  ;;  %v956_v5 = vld [vmem:[#allocation7 + $0x38] sm:$0xff] }
 0x5f8   :  { %1635 = vmatpush1.bf16.msra.mxu0 %v1986_v16  ;;  %v1666_v16 = vpack.c.bf16 %v956_v5, %v955_v3 }
 0x5f9   :  { %1637 = vmatprep.subr.bf16.mxu0 %v1989_v17 }
 0x5fa   :  { %1667 = vmatpush3.bf16.msra.mxu1 %v1666_v16 }
 0x5fc   :  { %1639 = vmatpush1.bf16.msra.mxu0 %v1995_v25 }
 0x5fd   :  { %1641 = vmatprep.subr.bf16.mxu0 %v1998_v26 }
 0x600   :  { %1643 = vmatpush1.bf16.msra.mxu0 %v2003_v34 }
 0x601   :  { %1645 = vmatprep.subr.bf16.mxu0 %v2006_v36 }
 0x604   :  { %1647 = vmatpush1.bf16.msra.mxu0 %v2011_v41 }
 0x605   :  { %1649 = vmatprep.subr.bf16.mxu0 %v2014_v42  ;;  %v973_v42 = vld [vmem:[#allocation7 + $0xc0] sm:$0xff] }
 0x608   :  { %1651 = vmatpush1.bf16.msra.mxu0 %v2019_v48  ;;  %v974_v48 = vld [vmem:[#allocation7 + $0xc8] sm:$0xff] }
 0x609   :  { %v1668_v55 = vpack.c.bf16 %v974_v48, %v973_v42 }
 0x60b   :  { %1669 = vmatprep.subr.bf16.mxu1 %v1668_v55 }
 0x60c   :  { %1671 = vmatpush3.bf16.msra.mxu1 %v1670_v1 }
 0x60d   :  { %1673 = vmatprep.subr.bf16.mxu1 %v1672_v7 }
 0x610   :  { %1675 = vmatpush3.bf16.msra.mxu1 %v1674_v12 }
 0x611   :  { %1677 = vmatprep.subr.bf16.mxu1 %v1676_v24 }
 0x614   :  { %1679 = vmatpush3.bf16.msra.mxu1 %v1678_v32 }
 0x615   :  { %1681 = vmatprep.subr.bf16.mxu1 %v1680_v0 }
 0x618   :  { %1683 = vmatpush3.bf16.msra.mxu1 %v1682_v39 }
 0x69e   :  { %v860_v17 = vpop.f32.mrb[12].mxu0 }
 0x69f   :  { %v1704_v25 = vadd.f32 %v860_v17, %v2088_v60  ;;  %v862_v26 = vpop.f32.mrb[13].mxu0 }
 0x6a0   :  { %v1705_v34 = vadd.f32 %v862_v26, %v2090_v62 }
 0x6a2   :  { %1748 = vtanh.f32 %v1705_v34 }
 0x6a3   :  { %1750 = vtanh.f32 %v1704_v25 }
 0x6ac   :  { %v1749_v36 = vpop.eup %1748 }
 0x6ad   :  { %v1751_v41 = vpop.eup %1750  ;;  %938 = vmatprep.mubr.f32.mxu0 %v1749_v36 }
 0x6ae   :  { %939 = vmatmul.mubr.f32.vlgmr.msra.gmra.mrb[14].mxu0 %v1751_v41 }
 0x781   :  { %v940_v40 = vpop.f32.mrb[14].mxu0 }
 0x782   :  { %v1706_v44 = vadd.f32 %v940_v40, %v2088_v60  ;;  %v942_v45 = vpop.f32.mrb[15].mxu0 }
 0x783   :  { %v1707_v49 = vadd.f32 %v942_v45, %v2090_v62 }
 0x785   :  { %1752 = vtanh.f32 %v1707_v49 }
 0x786   :  { %1754 = vtanh.f32 %v1706_v44 }
 0x78f   :  { %v1753_v51 = vpop.eup %1752 }
 0x790   :  { %v1755_v52 = vpop.eup %1754  ;;  %1052 = vmatprep.mubr.f32.mxu1 %v1753_v51 }
 0x791   :  { %1053 = vmatmul.mubr.f32.vlgmr.msra.gmra.mrb[8].mxu1 %v1755_v52 }
 0x864   :  { %v1105_v53 = vpop.f32.mrb[8].mxu1 }
 0x865   :  { %v1106_v4 = vpop.f32.mrb[9].mxu1 }
 0x866   :  { %v1107_v8 = vadd.f32 %v1106_v4, %v1105_v53 }
 0x868   :  { %v1055_v9 = vadd.f32 %v1107_v8, %v1072_v54 }
 0x86a   :  { %1058 = vst [vmem:[%s2301_s6] sm:$0xff] %v1055_v9 }
 0x86b   :  { %1063 = vsyncpa [#allocation4], 1 }
 0x86c   :  { %1064 = vsyncpa [#allocation6], 1 }

</bundles_post_ra>
